<compile_context>
chip_gen: v7x
topology: tpu7x:2x2x1
jax: 0.10.0
libtpu: 0.0.40
codegen_flags: <defaults>
</compile_context>

<pallas_src>
import functools

import jax
import jax.numpy as jnp
from jax import lax
from jax.experimental import pallas as pl
from jax.experimental.pallas import tpu as pltpu

TOP_K_PERCENT = 0.04
EPS = 1e-5


# --------------------------------------------------------------------------- kernel
def _lrp_linear_kernel(a_ref, r_ref, w_ref, out_ref, *, eps, k, mm_dtype):
    # Casts + z_plus clamp fused in-kernel (VPU work hidden under MXU/XLU slack).
    a = a_ref[...].astype(jnp.float32)                       # (TB, F_in)
    r = r_ref[...].astype(jnp.float32)                       # (TB, F_out)
    w = jnp.maximum(w_ref[...].astype(jnp.float32), 0.0)     # (F_out, F_in), W_+

    # relevance_filter: per-row threshold = k-th largest of r; keep elements >=
    # threshold.  k is small (top_k_percent * F_out = 5), so find it with k
    # unrolled max-removal passes (XLU lane-reduce -> VPU select chain).  This
    # chain is independent of the z matmul below, so LLO interleaves them.
    # TODO(synk): for layers where k grows past ~16, replace with a logarithmic
    # threshold search; ties keep >k elements vs torch.topk+scatter_ (identical
    # for generic distinct floats).
    vals = r
    thr = jnp.max(vals, axis=-1, keepdims=True)
    for _ in range(k - 1):
        vals = jnp.where(vals >= thr, -jnp.inf, vals)
        thr = jnp.max(vals, axis=-1, keepdims=True)
    r_f = jnp.where(r >= thr, r, 0.0)

    # z = a @ W^T + eps  (contract F_in on the MXU; no transpose materialized in
    # the wrapper).
    # TODO(synk): if the lowered Mosaic shows a vxpose of the W tile for this
    # contraction, pass a pre-transposed W^T as an extra constant-index input
    # and switch to a plain K-major dot.
    am = a.astype(mm_dtype)
    wm = w.astype(mm_dtype)
    z = lax.dot_general(am, wm, (((1,), (1,)), ((), ())),
                        preferred_element_type=jnp.float32) + eps

    # s = r_f / z via EUP reciprocal (z >= eps > 0; error << tolerance for one
    # layer — use approx=False if many LRP layers are stacked).
    s = r_f * pl.reciprocal(z, approx=True)

    # c = s @ W  (contract F_out), out = a * c  ->  lane-dense (TB, F_in) store.
    c = jnp.dot(s.astype(mm_dtype), wm, preferred_element_type=jnp.float32)
    out_ref[...] = a * c


# ---------------------------------------------------------------------- sizing glue
def _num_tensorcores():
    """TensorCores per chip: 2 on v7x, 1 on v5e/v6e.  Defensive lookups only."""
    try:
        info = pltpu.get_tpu_info()
        for name in ("num_tensorcores", "tensorcore_count", "num_cores",
                     "core_count", "num_cores_per_chip"):
            v = getattr(info, name, None)
            if isinstance(v, int) and v > 0:
                return v
    except Exception:
        pass
    try:
        kind = jax.devices()[0].device_kind.lower()
        if "v7" in kind:
            return 2
    except Exception:
        pass
    return 1


def _pick_tile_batch(batch, f_in, f_out, num_cores, vmem_budget_bytes=16 << 20):
    """Batch tile: split only across real TensorCores, cap against VMEM budget."""
    # Without an 8-divisible batch the only legal block is the full batch
    # (last-two-dims (8,128) rule: block dim must be a multiple of 8 or full).
    if batch % 8 != 0:
        return batch
    # Double-buffered a + r + out blocks (f32) per pipeline step must fit the
    # (v7x-halved) scoped VMEM budget; W (f_out*f_in*4 B) is resident on top.
    row_bytes = 4 * (2 * f_in + f_out)
    cap = max(8, (vmem_budget_bytes // (2 * row_bytes)) // 8 * 8)
    tb = batch
    if num_cores > 1 and batch >= 8 * num_cores:
        tb = max(8, (batch // num_cores) // 8 * 8)      # shard across TCs
    tb = min(tb, cap)
    # tb must divide batch exactly and stay a multiple of 8.
    while tb > 8 and batch % tb != 0:
        tb -= 8
    if batch % tb != 0:
        tb = batch
    return tb


# ------------------------------------------------------------------------------ glue
def relevance_propagation_linear(a, r, weight, *, eps=EPS,
                                 top_k_percent=TOP_K_PERCENT,
                                 matmul_dtype=jnp.float32):
    """z_plus-rule LRP through a Linear layer (bias is zeroed by the rule).

    matmul_dtype=jnp.bfloat16 cuts MXU passes ~3-6x for large f_in/f_out layers
    (all gens are bf16-native on the MXU); default stays f32 for exactness at
    small sizes.
    """
    B, f_in = a.shape
    f_out = weight.shape[0]
    k = max(1, int(top_k_percent * f_out))

    num_cores = _num_tensorcores()
    tb = _pick_tile_batch(B, f_in, f_out, num_cores)
    grid = (B // tb,)

    return pl.pallas_call(
        functools.partial(_lrp_linear_kernel, eps=eps, k=k, mm_dtype=matmul_dtype),
        out_shape=jax.ShapeDtypeStruct((B, f_in), jnp.float32),
        grid=grid,
        in_specs=[
            pl.BlockSpec((tb, f_in), lambda n: (n, 0)),       # a
            pl.BlockSpec((tb, f_out), lambda n: (n, 0)),      # r
            pl.BlockSpec((f_out, f_in), lambda n: (0, 0)),    # raw W (clamped in-kernel)
        ],
        out_specs=pl.BlockSpec((tb, f_in), lambda n: (n, 0)),
        compiler_params=pltpu.CompilerParams(
            dimension_semantics=("parallel",)),
    )(a, r, weight)


# ------------------------------------------------------------------------- reference
def _reference(a, r, weight, *, eps=EPS, top_k_percent=TOP_K_PERCENT):
    wp = jnp.clip(weight, 0.0, None)
    k = max(1, int(top_k_percent * r.shape[-1]))
    thr = lax.top_k(r, k)[0][:, -1:]
    r_f = jnp.where(r >= thr, r, 0.0)
    z = a @ wp.T + eps
    s = r_f / z
    c = s @ wp
    return a * c


if __name__ == "__main__":
    key = jax.random.PRNGKey(0)
    k_w, k_a, k_r = jax.random.split(key, 3)

    # Synthetic layer: Linear(in_features=256, out_features=128), z_plus rule.
    B, F_IN, F_OUT = 16, 256, 128
    weight = 0.2 * jax.random.normal(k_w, (F_OUT, F_IN), dtype=jnp.float32)
    a = jax.random.uniform(k_a, (B, F_IN), dtype=jnp.float32)    # post-ReLU-like acts
    r = jax.random.normal(k_r, (B, F_OUT), dtype=jnp.float32)    # relevance from above

    out = jax.block_until_ready(relevance_propagation_linear(a, r, weight))
    ref = _reference(a, r, weight)
    assert out.shape == (B, F_IN) and out.dtype == jnp.float32
    if not bool(jnp.allclose(out, ref, rtol=2e-2, atol=1e-3)):
        raise AssertionError("Pallas LRP linear deviates from reference")
    print("KERNEL_OK")
</pallas_src>

<mosaic_0001>
module attributes {stable_mosaic.version = 11 : i64} {
  func.func @_lrp_linear_kernel(%arg0: i32, %arg1: memref<16x256xf32, #tpu.memory_space<vmem>>, %arg2: memref<16x128xf32, #tpu.memory_space<vmem>>, %arg3: memref<128x256xf32, #tpu.memory_space<vmem>>, %arg4: memref<16x256xf32, #tpu.memory_space<vmem>>) attributes {dimension_semantics = [#tpu.dimension_semantics<parallel>], iteration_bounds = array<i64: 1>, scalar_prefetch = 0 : i64, scratch_operands = 0 : i64, tpu.core_type = #tpu.core_type<tc>, window_params = [{transform_indices = @transform_0, window_bounds = array<i64: 16, 256>}, {transform_indices = @transform_1, window_bounds = array<i64: 16, 128>}, {pipeline_mode = #tpu.pipeline_mode<synchronous>, transform_indices = @transform_2, window_bounds = array<i64: 128, 256>}, {transform_indices = @transform_3, window_bounds = array<i64: 16, 256>}]} {
    %c0 = arith.constant 0 : index
    %c0_0 = arith.constant 0 : index
    %0 = vector.load %arg1[%c0, %c0_0] : memref<16x256xf32, #tpu.memory_space<vmem>>, vector<16x256xf32>
    %c0_1 = arith.constant 0 : index
    %c0_2 = arith.constant 0 : index
    %1 = vector.load %arg2[%c0_1, %c0_2] : memref<16x128xf32, #tpu.memory_space<vmem>>, vector<16x128xf32>
    %c0_3 = arith.constant 0 : index
    %c0_4 = arith.constant 0 : index
    %2 = vector.load %arg3[%c0_3, %c0_4] : memref<128x256xf32, #tpu.memory_space<vmem>>, vector<128x256xf32>
    %cst = arith.constant 0.000000e+00 : f32
    %3 = vector.broadcast %cst : f32 to vector<128x256xf32>
    %4 = arith.maximumf %2, %3 : vector<128x256xf32>
    %cst_5 = arith.constant dense<0xFF800000> : vector<16xf32>
    %5 = vector.multi_reduction <maximumf>, %1, %cst_5 [1] : vector<16x128xf32> to vector<16xf32>
    %6 = vector.shape_cast %5 : vector<16xf32> to vector<16x1xf32>
    %7 = vector.broadcast %6 : vector<16x1xf32> to vector<16x128xf32>
    %8 = arith.cmpf oge, %1, %7 : vector<16x128xf32>
    %cst_6 = arith.constant 0xFF800000 : f32
    %9 = vector.broadcast %cst_6 : f32 to vector<16x128xf32>
    %10 = arith.select %8, %9, %1 : vector<16x128xi1>, vector<16x128xf32>
    %cst_7 = arith.constant dense<0xFF800000> : vector<16xf32>
    %11 = vector.multi_reduction <maximumf>, %10, %cst_7 [1] : vector<16x128xf32> to vector<16xf32>
    %12 = vector.shape_cast %11 : vector<16xf32> to vector<16x1xf32>
    %13 = vector.broadcast %12 : vector<16x1xf32> to vector<16x128xf32>
    %14 = arith.cmpf oge, %10, %13 : vector<16x128xf32>
    %cst_8 = arith.constant 0xFF800000 : f32
    %15 = vector.broadcast %cst_8 : f32 to vector<16x128xf32>
    %16 = arith.select %14, %15, %10 : vector<16x128xi1>, vector<16x128xf32>
    %cst_9 = arith.constant dense<0xFF800000> : vector<16xf32>
    %17 = vector.multi_reduction <maximumf>, %16, %cst_9 [1] : vector<16x128xf32> to vector<16xf32>
    %18 = vector.shape_cast %17 : vector<16xf32> to vector<16x1xf32>
    %19 = vector.broadcast %18 : vector<16x1xf32> to vector<16x128xf32>
    %20 = arith.cmpf oge, %16, %19 : vector<16x128xf32>
    %cst_10 = arith.constant 0xFF800000 : f32
    %21 = vector.broadcast %cst_10 : f32 to vector<16x128xf32>
    %22 = arith.select %20, %21, %16 : vector<16x128xi1>, vector<16x128xf32>
    %cst_11 = arith.constant dense<0xFF800000> : vector<16xf32>
    %23 = vector.multi_reduction <maximumf>, %22, %cst_11 [1] : vector<16x128xf32> to vector<16xf32>
    %24 = vector.shape_cast %23 : vector<16xf32> to vector<16x1xf32>
    %25 = vector.broadcast %24 : vector<16x1xf32> to vector<16x128xf32>
    %26 = arith.cmpf oge, %22, %25 : vector<16x128xf32>
    %cst_12 = arith.constant 0xFF800000 : f32
    %27 = vector.broadcast %cst_12 : f32 to vector<16x128xf32>
    %28 = arith.select %26, %27, %22 : vector<16x128xi1>, vector<16x128xf32>
    %cst_13 = arith.constant dense<0xFF800000> : vector<16xf32>
    %29 = vector.multi_reduction <maximumf>, %28, %cst_13 [1] : vector<16x128xf32> to vector<16xf32>
    %30 = vector.shape_cast %29 : vector<16xf32> to vector<16x1xf32>
    %31 = vector.broadcast %30 : vector<16x1xf32> to vector<16x128xf32>
    %32 = arith.cmpf oge, %1, %31 : vector<16x128xf32>
    %cst_14 = arith.constant 0.000000e+00 : f32
    %33 = vector.broadcast %cst_14 : f32 to vector<16x128xf32>
    %34 = arith.select %32, %1, %33 : vector<16x128xi1>, vector<16x128xf32>
    %cst_15 = arith.constant dense<0.000000e+00> : vector<16x128xf32>
    %35 = tpu.matmul %0, %4, %cst_15 {dimension_numbers = #tpu.dot_dimension_numbers<[1], [1], [0], [0], [0, 0, 1, 0], [], []>} : vector<16x256xf32>, vector<128x256xf32>, vector<16x128xf32> -> vector<16x128xf32>
    %cst_16 = arith.constant 9.99999974E-6 : f32
    %36 = vector.broadcast %cst_16 : f32 to vector<16x128xf32>
    %37 = arith.addf %35, %36 : vector<16x128xf32>
    %38 = tpu.reciprocal %37 {approx = true} : vector<16x128xf32> -> vector<16x128xf32>
    %39 = arith.mulf %34, %38 : vector<16x128xf32>
    %cst_17 = arith.constant dense<0.000000e+00> : vector<16x256xf32>
    %40 = tpu.matmul %39, %4, %cst_17 {dimension_numbers = #tpu.dot_dimension_numbers<[1], [0], [0], [1], [0, 0, 1, 1], [], []>} : vector<16x128xf32>, vector<128x256xf32>, vector<16x256xf32> -> vector<16x256xf32>
    %41 = arith.mulf %0, %40 : vector<16x256xf32>
    %c0_18 = arith.constant 0 : index
    %c0_19 = arith.constant 0 : index
    %42 = vector.load %arg4[%c0_18, %c0_19] : memref<16x256xf32, #tpu.memory_space<vmem>>, vector<16x256xf32>
    tpu.vector_store %arg4[%c0_18, %c0_19], %41 {strides = array<i32>} : memref<16x256xf32, #tpu.memory_space<vmem>>, vector<16x256xf32>,
    return
  }
  func.func @transform_0(%arg0: i32) -> (i32, i32) {
    %c0_i32 = arith.constant 0 : i32
    %c0_i32_0 = arith.constant 0 : i32
    return %arg0, %c0_i32 : i32, i32
  }
  func.func @transform_1(%arg0: i32) -> (i32, i32) {
    %c0_i32 = arith.constant 0 : i32
    %c0_i32_0 = arith.constant 0 : i32
    return %arg0, %c0_i32 : i32, i32
  }
  func.func @transform_2(%arg0: i32) -> (i32, i32) {
    %c0_i32 = arith.constant 0 : i32
    %c0_i32_0 = arith.constant 0 : i32
    %c0_i32_1 = arith.constant 0 : i32
    return %c0_i32, %c0_i32_0 : i32, i32
  }
  func.func @transform_3(%arg0: i32) -> (i32, i32) {
    %c0_i32 = arith.constant 0 : i32
    %c0_i32_0 = arith.constant 0 : i32
    return %arg0, %c0_i32 : i32, i32
  }
}

</mosaic_0001>

<bundles_post_ra>
// kernel: tpu_custom_call.1
= control target key start
LH: loop header
LB: loop body
LE: loop exit
PB: predicated region body
PF: predicated region fallthrough
CT: control target
= control target key end

     0   :  { %8 = vsyncpa [#allocation3], 0  ;;  %s633_s0 = inlined_call_operand.hbm [shape: f32[16,256], index: 0, kind: input, shape index: {}]   ;;  %s634_s1 = inlined_call_operand.hbm [shape: f32[16,128], index: 1, kind: input, shape index: {}]   ;;  %s635_s2 = inlined_call_operand.hbm [shape: f32[128,256], index: 2, kind: input, shape index: {}]   ;;  %s636_s3 = inlined_call_operand.hbm [shape: f32[16,256], index: 3, kind: output, shape index: {}]  }
   0x1   :  { %9 = vsyncpa [#allocation6], 0 }
   0x2   :  { %10 = vsyncpa [#allocation4], 0  ;;  %s519_s12 = smov [#allocation5]   ;;  %s425_s16 = scalar_lea.hbm %s634_s1, 256 }
   0x3   :  { %s28_s13 = sshll.u32 %s519_s12, 4  ;;  %p426_p0 = scmp.ne.s32.totalorder %s634_s1, %s425_s16  ;;  %s29_s13 = int_to_ptr.vmem [resolvable:$true] %s28_s13 }
   0x4   :  { %p429_p1 = scmp.lt.u32.totalorder %s425_s16, %s634_s1 }
   0x6   :  { %p431_p2 = pnand %p429_p1, %p426_p0 }
   0x8   :  { %434 = shalt.err (!%p431_p2)
}
   0x9   :  { %s435_s21 = scalar_lea.vmem %s29_s13, 256  ;;  %p440_p4 = scmp.lt.s32.totalorder %s29_s13, %s29_s13 }
   0xa   :  { %p436_p3 = scmp.ne.s32.totalorder %s29_s13, %s435_s21  ;;  %p441_p5 = scmp.lt.s32.totalorder %s435_s21, %s435_s21 }
   0xc   :  { %p442_p6 = por %p441_p5, %p440_p4 }
   0xe   :  { %p443_p7 = pnand %p442_p6, %p436_p3 }
  0x10   :  { %446 = shalt.err (!%p443_p7)
}
  0x11   :  { %s520_s22 = smov 128   ;;  %s521_s23 = smov 8  }
  0x12   :  { %34 = dma.hbm_to_vmem [thread:$0]  %s634_s1, 256, %s29_s13, [#allocation6], %s520_s22, %s520_s22, %s521_s23  }
  0x13   :  { %s522_s26 = smov [#allocation2]   ;;  %s447_s30 = scalar_lea.hbm %s633_s0, 512 }
  0x14   :  { %s16_s27 = sshll.u32 %s522_s26, 4  ;;  %p448_p8 = scmp.ne.s32.totalorder %s633_s0, %s447_s30  ;;  %s17_s27 = int_to_ptr.vmem [resolvable:$true] %s16_s27 }
  0x15   :  { %p451_p9 = scmp.lt.u32.totalorder %s447_s30, %s633_s0 }
  0x17   :  { %p453_p10 = pnand %p451_p9, %p448_p8 }
  0x19   :  { %456 = shalt.err (!%p453_p10)
}
  0x1a   :  { %s457_s8 = scalar_lea.vmem %s17_s27, 512  ;;  %p462_p12 = scmp.lt.s32.totalorder %s17_s27, %s17_s27 }
  0x1b   :  { %p458_p11 = scmp.ne.s32.totalorder %s17_s27, %s457_s8  ;;  %p463_p13 = scmp.lt.s32.totalorder %s457_s8, %s457_s8 }
  0x1d   :  { %p464_p0 = por %p463_p13, %p462_p12 }
  0x1f   :  { %p465_p1 = pnand %p464_p0, %p458_p11 }
  0x21   :  { %468 = shalt.err (!%p465_p1)
}
  0x22   :  { %s523_s1 = smov 256   ;;  %s524_s9 = smov 16  }
  0x23   :  { %22 = dma.hbm_to_vmem [thread:$0]  %s633_s0, 512, %s17_s27, [#allocation3], %s523_s1, %s523_s1, %s524_s9  }
  0x24   :  { %s525_s12 = smov [#allocation7]   ;;  %s469_s16 = scalar_lea.hbm %s635_s2, 4096 }
  0x25   :  { %s40_s13 = sshll.u32 %s525_s12, 4  ;;  %p470_p2 = scmp.ne.s32.totalorder %s635_s2, %s469_s16  ;;  %s41_s13 = int_to_ptr.vmem [resolvable:$true] %s40_s13 }
  0x26   :  { %p473_p3 = scmp.lt.u32.totalorder %s469_s16, %s635_s2 }
  0x28   :  { %p475_p4 = pnand %p473_p3, %p470_p2 }
  0x2a   :  { %478 = shalt.err (!%p475_p4)
}
  0x2b   :  { %s479_s21 = scalar_lea.vmem %s41_s13, 4096  ;;  %p484_p6 = scmp.lt.s32.totalorder %s41_s13, %s41_s13 }
  0x2c   :  { %p480_p5 = scmp.ne.s32.totalorder %s41_s13, %s479_s21  ;;  %p485_p7 = scmp.lt.s32.totalorder %s479_s21, %s479_s21 }
  0x2e   :  { %p486_p8 = por %p485_p7, %p484_p6 }
  0x30   :  { %p487_p9 = pnand %p486_p8, %p480_p5 }
  0x32   :  { %490 = shalt.err (!%p487_p9)
}
  0x33   :  { %46 = dma.hbm_to_vmem [thread:$0]  %s635_s2, 4096, %s41_s13, [#allocation6], %s523_s1, %s523_s1, %s524_s9  }
  0x34   :  { %513 = dma.done.wait [#allocation3], 512  }
  0x35   :  { %514 = vsyncadd [#allocation3], 4294966784 }
  0x36   :  { %515 = dma.done.wait [#allocation6], 4352  }
  0x37   :  { %516 = vsyncadd [#allocation6], 4294962944  ;;  %v590_v0 = vld [vmem:[#allocation5] sm:$0xff]  ;;  %v593_v1 = vld [vmem:[#allocation5 + $0x8] sm:$0xff]  ;;  %s527_s2 = smov [#allocation8]  }
  0x38   :  { %126 = vmax.xlane.f32.xlu0 %v590_v0  ;;  %v63_v10 = vld [vmem:[#allocation7 + $0x8] sm:$0xff]  ;;  %v65_v11 = vld [vmem:[#allocation7 + $0x18] sm:$0xff]  ;;  %v62_v14 = vld [vmem:[#allocation7] sm:$0xff]  ;;  %s335_s23 = sshll.u32 %s527_s2, 4  ;;  %s336_s23 = int_to_ptr.vmem [resolvable:$true] %s335_s23 }
  0x39   :  { %v95_v12 = vmax.f32 %v63_v10, 0.0  ;;  %v97_v13 = vmax.f32 %v65_v11, 0.0  ;;  %v64_v15 = vld [vmem:[#allocation7 + $0x10] sm:$0xff]  ;;  %v94_v16 = vmax.f32 %v62_v14, 0.0  ;;  %v67_v20 = vld [vmem:[#allocation7 + $0x28] sm:$0xff]  ;;  %v69_v21 = vld [vmem:[#allocation7 + $0x38] sm:$0xff]  ;;  %p496_p11 = scmp.lt.s32.totalorder %s336_s23, %s336_s23 }
  0x3a   :  { %v96_v17 = vmax.f32 %v64_v15, 0.0  ;;  %v99_v22 = vmax.f32 %v67_v20, 0.0  ;;  %v101_v23 = vmax.f32 %v69_v21, 0.0  ;;  %v66_v24 = vld [vmem:[#allocation7 + $0x20] sm:$0xff]  ;;  %v68_v25 = vld [vmem:[#allocation7 + $0x30] sm:$0xff]  ;;  %v71_v29 = vld [vmem:[#allocation7 + $0x48] sm:$0xff] }
  0x3b   :  { %v348_v18 = vpack.c.bf16 %v97_v13, %v95_v12  ;;  %v98_v26 = vmax.f32 %v66_v24, 0.0  ;;  %v100_v27 = vmax.f32 %v68_v25, 0.0  ;;  %v73_v30 = vld [vmem:[#allocation7 + $0x58] sm:$0xff]  ;;  %v70_v31 = vld [vmem:[#allocation7 + $0x40] sm:$0xff]  ;;  %v103_v33 = vmax.f32 %v71_v29, 0.0  ;;  %v72_v35 = vld [vmem:[#allocation7 + $0x50] sm:$0xff] }
  0x3c   :  { %128 = vmax.xlane.f32.xlu0 %v593_v1  ;;  %v350_v19 = vpack.c.bf16 %v96_v17, %v94_v16  ;;  %v352_v28 = vpack.c.bf16 %v101_v23, %v99_v22  ;;  %v105_v34 = vmax.f32 %v73_v30, 0.0  ;;  %v102_v36 = vmax.f32 %v70_v31, 0.0  ;;  %v75_v37 = vld [vmem:[#allocation7 + $0x68] sm:$0xff]  ;;  %v77_v38 = vld [vmem:[#allocation7 + $0x78] sm:$0xff]  ;;  %v74_v42 = vld [vmem:[#allocation7 + $0x60] sm:$0xff]  ;;  %s491_s24 = scalar_lea.vmem %s336_s23, 512 }
  0x3d   :  { %349 = vmatprep.subr.bf16.mxu0 %v348_v18  ;;  %381 = vmatprep.subr.bf16.mxu1 %v348_v18  ;;  %v354_v32 = vpack.c.bf16 %v100_v27, %v98_v26  ;;  %v104_v39 = vmax.f32 %v72_v35, 0.0  ;;  %v107_v40 = vmax.f32 %v75_v37, 0.0  ;;  %v109_v41 = vmax.f32 %v77_v38, 0.0  ;;  %v76_v43 = vld [vmem:[#allocation7 + $0x70] sm:$0xff]  ;;  %v79_v45 = vld [vmem:[#allocation7 + $0x88] sm:$0xff]  ;;  %v81_v46 = vld [vmem:[#allocation7 + $0x98] sm:$0xff]  ;;  %p492_p10 = scmp.ne.s32.totalorder %s336_s23, %s491_s24  ;;  %p497_p12 = scmp.lt.s32.totalorder %s491_s24, %s491_s24 }
  0x3e   :  { %351 = vmatpush1.bf16.xpose.msra.mxu0 %v350_v19  ;;  %383 = vmatpush1.bf16.msra.mxu1 %v350_v19  ;;  %v356_v44 = vpack.c.bf16 %v105_v34, %v103_v33  ;;  %v106_v48 = vmax.f32 %v74_v42, 0.0  ;;  %v108_v49 = vmax.f32 %v76_v43, 0.0  ;;  %v111_v51 = vmax.f32 %v79_v45, 0.0  ;;  %v78_v53 = vld [vmem:[#allocation7 + $0x80] sm:$0xff]  ;;  %v80_v54 = vld [vmem:[#allocation7 + $0x90] sm:$0xff]  ;;  %v83_v55 = vld [vmem:[#allocation7 + $0xa8] sm:$0xff] }
  0x3f   :  { %353 = vmatprep.subr.bf16.mxu0 %v352_v28  ;;  %385 = vmatprep.subr.bf16.mxu1 %v352_v28  ;;  %v358_v47 = vpack.c.bf16 %v104_v39, %v102_v36  ;;  %v360_v50 = vpack.c.bf16 %v109_v41, %v107_v40  ;;  %v113_v52 = vmax.f32 %v81_v46, 0.0  ;;  %v85_v56 = vld [vmem:[#allocation7 + $0xb8] sm:$0xff]  ;;  %v110_v59 = vmax.f32 %v78_v53, 0.0  ;;  %v86_v14 = vld [vmem:[#allocation7 + $0xc0] sm:$0xff]  ;;  %v88_v15 = vld [vmem:[#allocation7 + $0xd0] sm:$0xff]  ;;  %p498_p13 = por %p497_p12, %p496_p11 }
  0x40   :  { %v606_v57 = vld [vmem:[#allocation2 + $0x8] sm:$0xff]  ;;  %v362_v58 = vpack.c.bf16 %v108_v49, %v106_v48  ;;  %v112_v60 = vmax.f32 %v80_v54, 0.0  ;;  %v115_v62 = vmax.f32 %v83_v55, 0.0  ;;  %v117_v63 = vmax.f32 %v85_v56, 0.0  ;;  %v91_v16 = vld [vmem:[#allocation7 + $0xe8] sm:$0xff]  ;;  %v90_v24 = vld [vmem:[#allocation7 + $0xe0] sm:$0xff] }
  0x41   :  { %230 = vmatprep.mubr.f32.mxu0 %v606_v57  ;;  %v364_v61 = vpack.c.bf16 %v113_v52, %v111_v51  ;;  %v93_v17 = vld [vmem:[#allocation7 + $0xf8] sm:$0xff]  ;;  %v118_v19 = vmax.f32 %v86_v14, 0.0  ;;  %v120_v20 = vmax.f32 %v88_v15, 0.0  ;;  %v123_v22 = vmax.f32 %v91_v16, 0.0  ;;  %v92_v25 = vld [vmem:[#allocation7 + $0xf0] sm:$0xff]  ;;  %v58_v33 = vld [vmem:[#allocation2 + $0x10] sm:$0xff]  ;;  %p499_p0 = pnand %p498_p13, %p492_p10 }
  0x42   :  { %387 = vmatpush1.bf16.msra.mxu1 %v354_v32  ;;  %v368_v11 = vpack.c.bf16 %v117_v63, %v115_v62  ;;  %v125_v23 = vmax.f32 %v93_v17, 0.0  ;;  %v122_v27 = vmax.f32 %v90_v24, 0.0  ;;  %v124_v28 = vmax.f32 %v92_v25, 0.0  ;;  %v56_v31 = vld [vmem:[#allocation2] sm:$0xff] }
  0x43   :  { %389 = vmatprep.subr.bf16.mxu1 %v356_v44  ;;  %v374_v26 = vpack.c.bf16 %v120_v20, %v118_v19 }
  0x44   :  { %v376_v29 = vpack.c.bf16 %v125_v23, %v123_v22  ;;  %v378_v30 = vpack.c.bf16 %v124_v28, %v122_v27 }
  0x46   :  { %355 = vmatpush1.bf16.xpose.msra.mxu0 %v354_v32  ;;  %391 = vmatpush1.bf16.msra.mxu1 %v358_v47  ;;  %v59_v32 = vld [vmem:[#allocation2 + $0x18] sm:$0xff] }
  0x47   :  { %357 = vmatprep.subr.bf16.mxu0 %v356_v44  ;;  %393 = vmatprep.subr.bf16.mxu1 %v360_v50 }
  0x4a   :  { %395 = vmatpush1.bf16.msra.mxu1 %v362_v58 }
  0x4b   :  { %397 = vmatprep.subr.bf16.mxu1 %v364_v61 }
  0x4e   :  { %359 = vmatpush1.bf16.xpose.msra.mxu0 %v358_v47 }
  0x4f   :  { %361 = vmatprep.subr.bf16.mxu0 %v360_v50 }
  0x56   :  { %363 = vmatpush1.bf16.xpose.msra.mxu0 %v362_v58 }
  0x57   :  { %365 = vmatprep.subr.bf16.mxu0 %v364_v61 }
  0xc5   :  { %v127_v2 = vpop.xlane.xlu0 %126 }
  0xc6   :  { %vm130_vm0 = vcmp.ge.f32.partialorder %v590_v0, %v127_v2  ;;  %v82_v2 = vld [vmem:[#allocation7 + $0xa0] sm:$0xff] }
  0xc7   :  { %v132_v3 = vsel %vm130_vm0, -inf, %v590_v0 }
  0xc8   :  { %134 = vmax.xlane.f32.xlu1 %v132_v3 }
  0xc9   :  { %v129_v4 = vpop.xlane.xlu0 %128 }
  0xca   :  { %vm131_vm1 = vcmp.ge.f32.partialorder %v593_v1, %v129_v4  ;;  %v87_v4 = vld [vmem:[#allocation7 + $0xc8] sm:$0xff] }
  0xcb   :  { %v133_v5 = vsel %vm131_vm1, -inf, %v593_v1  ;;  %v119_v12 = vmax.f32 %v87_v4, 0.0 }
  0xcc   :  { %136 = vmax.xlane.f32.xlu1 %v133_v5 }
 0x155   :  { %v135_v6 = vpop.xlane.xlu1 %134 }
 0x156   :  { %vm138_vm2 = vcmp.ge.f32.partialorder %v132_v3, %v135_v6  ;;  %v366_v6 = vpack.c.bf16 %v112_v60, %v110_v59 }
 0x157   :  { %v600_v7 = vsel %vm138_vm2, -inf, %v132_v3  ;;  %v84_v3 = vld [vmem:[#allocation7 + $0xb0] sm:$0xff] }
 0x158   :  { %142 = vmax.xlane.f32.xlu0 %v600_v7  ;;  %v116_v10 = vmax.f32 %v84_v3, 0.0  ;;  %399 = vmatpush1.bf16.msra.mxu1 %v366_v6 }
 0x159   :  { %v137_v8 = vpop.xlane.xlu1 %136  ;;  %401 = vmatprep.subr.bf16.mxu1 %v368_v11  ;;  %367 = vmatpush1.bf16.xpose.msra.mxu0 %v366_v6 }
 0x15a   :  { %vm139_vm3 = vcmp.ge.f32.partialorder %v133_v5, %v137_v8  ;;  %v114_v8 = vmax.f32 %v82_v2, 0.0  ;;  %369 = vmatprep.subr.bf16.mxu0 %v368_v11 }
 0x15b   :  { %v603_v9 = vsel %vm139_vm3, -inf, %v133_v5  ;;  %v89_v5 = vld [vmem:[#allocation7 + $0xd8] sm:$0xff] }
 0x15c   :  { %144 = vmax.xlane.f32.xlu1 %v603_v9  ;;  %v121_v13 = vmax.f32 %v89_v5, 0.0  ;;  %v370_v18 = vpack.c.bf16 %v116_v10, %v114_v8 }
 0x15e   :  { %v372_v21 = vpack.c.bf16 %v121_v13, %v119_v12  ;;  %403 = vmatpush1.bf16.msra.mxu1 %v370_v18 }
 0x160   :  { %405 = vmatprep.subr.bf16.mxu1 %v372_v21 }
 0x161   :  { %371 = vmatpush1.bf16.xpose.msra.mxu0 %v370_v18 }
 0x162   :  { %407 = vmatpush1.bf16.msra.mxu1 %v374_v26  ;;  %373 = vmatprep.subr.bf16.mxu0 %v372_v21 }
 0x163   :  { %409 = vmatprep.subr.bf16.mxu1 %v376_v29 }
 0x166   :  { %411 = vmatpush1.bf16.msra.mxu1 %v378_v30 }
 0x169   :  { %375 = vmatpush1.bf16.xpose.msra.mxu0 %v374_v26 }
 0x16a   :  { %377 = vmatprep.subr.bf16.mxu0 %v376_v29 }
 0x171   :  { %379 = vmatpush1.bf16.xpose.msra.mxu0 %v378_v30 }
 0x178   :  { %231 = vmatmul.mubr.f32.vlgmr.msra.gmra.mrb[0].mxu0 %v56_v31 }
 0x179   :  { %235 = vmatprep.mubr.f32.mxu0 %v59_v32 }
 0x17c   :  { %236 = vmatmul.mubr.f32.gmra.mrb[2].mxu0 %v58_v33 }
 0x1e5   :  { %v143_v34 = vpop.xlane.xlu0 %142 }
 0x1e6   :  { %vm146_vm4 = vcmp.ge.f32.partialorder %v600_v7, %v143_v34 }
 0x1e7   :  { %v148_v35 = vsel %vm146_vm4, -inf, %v600_v7  ;;  %v526_v7 = vmov 0.0  }
 0x1e8   :  { %150 = vmax.xlane.f32.xlu0 %v148_v35  ;;  %309 = vmatprep.mubr.f32.mxu1 %v526_v7 }
 0x1e9   :  { %v145_v36 = vpop.xlane.xlu1 %144 }
 0x1ea   :  { %vm147_vm5 = vcmp.ge.f32.partialorder %v603_v9, %v145_v36 }
 0x1eb   :  { %v149_v37 = vsel %vm147_vm5, -inf, %v603_v9 }
 0x1ec   :  { %152 = vmax.xlane.f32.xlu1 %v149_v37 }
 0x24b   :  { %v232_v41 = vpop.f32.mrb[0].mxu0 }
 0x24c   :  { %v234_v42 = vpop.f32.mrb[1].mxu0  ;;  %v233_v46 = vadd.f32 1e-05, %v232_v41 }
 0x24e   :  { %421 = vrcp.f32 %v233_v46 }
 0x24f   :  { %v237_v44 = vpop.f32.mrb[2].mxu0 }
 0x250   :  { %v239_v45 = vpop.f32.mrb[3].mxu0  ;;  %v238_v47 = vadd.f32 1e-05, %v237_v44 }
 0x252   :  { %423 = vrcp.f32 %v238_v47 }
 0x258   :  { %v422_v9 = vpop.eup %421 }
 0x25c   :  { %v424_v51 = vpop.eup %423 }
 0x275   :  { %v151_v38 = vpop.xlane.xlu0 %150 }
 0x276   :  { %vm154_vm6 = vcmp.ge.f32.partialorder %v148_v35, %v151_v38 }
 0x277   :  { %v156_v39 = vsel %vm154_vm6, -inf, %v148_v35 }
 0x278   :  { %158 = vmax.xlane.f32.xlu0 %v156_v39 }
 0x279   :  { %v153_v40 = vpop.xlane.xlu1 %152 }
 0x27a   :  { %vm155_vm7 = vcmp.ge.f32.partialorder %v149_v37, %v153_v40 }
 0x27b   :  { %v157_v43 = vsel %vm155_vm7, -inf, %v149_v37 }
 0x27c   :  { %160 = vmax.xlane.f32.xlu1 %v157_v43 }
 0x305   :  { %v159_v48 = vpop.xlane.xlu0 %158 }
 0x306   :  { %vm162_vm8 = vcmp.ge.f32.partialorder %v590_v0, %v159_v48 }
 0x307   :  { %v164_v49 = vsel %vm162_vm8, %v590_v0, 0.0 }
 0x308   :  { %v243_v50 = vmul.f32 %v422_v9, %v164_v49 }
 0x309   :  { %v161_v52 = vpop.xlane.xlu1 %160 }
 0x30a   :  { %vm163_vm9 = vcmp.ge.f32.partialorder %v593_v1, %v161_v52  ;;  %310 = vmatmul.mubr.f32.vlgmr.msra.gmra.mrb[0].mxu1 %v243_v50 }
 0x30b   :  { %v165_v53 = vsel %vm163_vm9, %v593_v1, 0.0  ;;  %315 = vmatprep.mubr.f32.mxu1 %v526_v7 }
 0x30c   :  { %v244_v54 = vmul.f32 %v424_v51, %v165_v53 }
 0x30e   :  { %316 = vmatmul.mubr.f32.gmra.mrb[2].mxu1 %v244_v54 }
 0x3dd   :  { %v311_v55 = vpop.f32.mrb[0].mxu1 }
 0x3de   :  { %v322_v56 = vmul.f32 %v311_v55, %v56_v31  ;;  %v313_v58 = vpop.f32.mrb[1].mxu1 }
 0x3df   :  { %v323_v59 = vmul.f32 %v313_v58, %v606_v57 }
 0x3e0   :  { %326 = vst [vmem:[#allocation8] sm:$0xff] %v322_v56 }
 0x3e1   :  { %327 = vst [vmem:[#allocation8 + $0x8] sm:$0xff] %v323_v59  ;;  %v317_v0 = vpop.f32.mrb[2].mxu1 }
 0x3e2   :  { %v324_v60 = vmul.f32 %v317_v0, %v58_v33  ;;  %v319_v61 = vpop.f32.mrb[3].mxu1 }
 0x3e3   :  { %v325_v62 = vmul.f32 %v319_v61, %v59_v32 }
 0x3e4   :  { %328 = vst [vmem:[#allocation8 + $0x10] sm:$0xff] %v324_v60 }
 0x3e5   :  { %329 = vst [vmem:[#allocation8 + $0x18] sm:$0xff] %v325_v62 }
 0x3e6   :  { %502 = shalt.err (!%p499_p0)
}
 0x3e7   :  { %s503_s27 = scalar_lea.hbm %s636_s3, 512 }
 0x3e8   :  { %p504_p1 = scmp.ne.s32.totalorder %s636_s3, %s503_s27  ;;  %p507_p2 = scmp.lt.u32.totalorder %s503_s27, %s636_s3 }
 0x3ea   :  { %p509_p3 = pnand %p507_p2, %p504_p1 }
 0x3ec   :  { %512 = shalt.err (!%p509_p3)
}
 0x3ed   :  { %341 = dma.vmem_to_hbm [thread:$0]  %s336_s23, 512, %s636_s3, [#allocation4], %s523_s1, %s523_s1, %s524_s9  }
 0x3ee   :  { %517 = dma.done.wait [#allocation4], 512  }
 0x3ef   :  { %518 = vsyncadd [#allocation4], 4294966784 }
 0x3f0   :  { %345 = vsyncpa [#allocation3], 1 }
 0x3f1   :  { %346 = vsyncpa [#allocation6], 1 }
 0x3f2   :  { %347 = vsyncpa [#allocation4], 1 }

</bundles_post_ra>
